<compile_context>
chip_gen: v6e
topology: v6e:2x2x1
jax: 0.10.0
libtpu: 0.0.40
codegen_flags: <defaults>
</compile_context>

<pallas_src>
import jax
import jax.numpy as jnp
from jax.experimental import pallas as pl
from jax.experimental.pallas import tpu as pltpu


def _round_up(x, m):
    return ((x + m - 1) // m) * m


def _vmem_budget_bytes():
    """VMEM budget: physical cap minus ~16 MiB headroom (never below cap/2).
    v5e/v6e: 128 MiB physical, v7x: 64 MiB per TensorCore."""
    try:
        cap = int(pltpu.get_tpu_info().vmem_capacity_bytes)
    except Exception:
        cap = 64 * 1024 * 1024  # conservative default (v7x per-TC VMEM)
    return max(cap // 2, cap - 16 * 1024 * 1024)


def hybrid_embed_kernel(patches_ref, wc_ref, bc_ref, wp_ref, bp_ref, out_ref):
    # patches_ref: (TILE_M, K)      compute dtype (bf16 or f32), streamed
    # wc_ref:      (K, F_pad)       compute dtype, VMEM-resident (Buffered(1))
    # bc_ref:      (1, F_pad)       f32
    # wp_ref:      (F_pad, E_pad)   compute dtype, VMEM-resident (Buffered(1))
    # bp_ref:      (1, E_pad)       f32
    # out_ref:     (TILE_M, E_pad)  output dtype
    feat = jnp.dot(patches_ref[...], wc_ref[...],
                   preferred_element_type=jnp.float32)
    # Bias + ReLU + downcast in ONE f32 pass (no f32 scratch round-trip;
    # f32 VPU math is required on v5e which has no bf16 VALU).
    feat = jnp.maximum(feat + bc_ref[...], 0.0).astype(wp_ref.dtype)
    out = jnp.dot(feat, wp_ref[...], preferred_element_type=jnp.float32)
    out_ref[...] = (out + bp_ref[...]).astype(out_ref.dtype)


def hybrid_embed_forward(x, conv_w, conv_b, proj_w, proj_b, *, patch=4,
                         compute_dtype=jnp.bfloat16, out_dtype=None,
                         max_tile_m=1024):
    """x: (B, C_in, H, W) NCHW.  Returns (B, N, embed_dim)."""
    B, C_in, H, W = x.shape
    Hf, Wf = H // patch, W // patch
    N = Hf * Wf
    M = B * N
    feature_dim = conv_w.shape[0]
    embed_dim = proj_w.shape[0]
    K = C_in * patch * patch

    # Lane-align only the weight/output lane dims (full MXU lanes, unmasked
    # vector stores).  K stays UNPADDED: it is the full last dim of the
    # streamed patches array, so its BlockSpec is still legal.
    F_pad = _round_up(feature_dim, 128)
    E_pad = _round_up(embed_dim, 128)

    out_dtype = x.dtype if out_dtype is None else out_dtype
    cs = jnp.dtype(compute_dtype).itemsize
    osz = jnp.dtype(out_dtype).itemsize

    # --- VMEM budgeting ------------------------------------------------------
    budget = _vmem_budget_bytes()
    # Single-buffered (Buffered(1)) weights + tiny f32 biases.
    weight_bytes = (K * F_pad + F_pad * E_pad) * cs + (F_pad + E_pad) * 4

    def per_row(n_in_buf):
        # n_in_buf patches buffers + double-buffered output + f32 matmul temp.
        return n_in_buf * K * cs + 2 * E_pad * osz + F_pad * 4

    if weight_bytes + 256 * per_row(2) > budget:
        # TODO(synk): tile feature_dim / embed_dim across the grid when the
        # VMEM-resident weights alone exceed the budget (very large F/E).
        raise NotImplementedError(
            "HybridEmbed weights too large for VMEM-resident kernel; "
            "F/E tiling fallback not implemented.")

    tile_cap = (budget - weight_bytes) // per_row(2)
    tile_cap = max(256, (tile_cap // 256) * 256)        # 256-row floor/rounding
    TILE_M = int(min(max_tile_m, tile_cap))
    if M <= TILE_M:
        TILE_M = int(_round_up(M, 16))  # single tile, no wasted padded rows

    grid_m = int(pl.cdiv(M, TILE_M))

    # Triple-buffer the streamed patches input if spare VMEM allows and there
    # are enough tiles to pipeline (hides DMA latency on v6e's spare VMEM).
    spare = budget - weight_bytes - TILE_M * per_row(2)
    n_in_buf = 3 if (grid_m > 2 and spare >= TILE_M * K * cs) else 2

    # --- glue: im2col for the stride==kernel "patchify" conv ------------------
    # (B,C,Hf,p,Wf,p) -> (B,Hf,Wf,C,p,p) -> (M,K); row order matches
    # flatten(2).transpose(1,2) and Conv2d weight flattening exactly.  The cast
    # to compute_dtype fuses into the transpose, so the only materialized copy
    # is the (M, K) compute-dtype patch matrix (no K or M padding in HBM).
    # TODO(synk): fuse the im2col into the kernel (BlockSpec over raw x with an
    # in-kernel relayout) to remove this HBM round trip; skipped because the
    # (C,p,Wf,p)->(Wf,C*p*p) relayout lands on a patch-wide (=4) lane dim and
    # needs dedicated sublane/lane swizzling to avoid being XLU/layout-bound.
    patches = x.reshape(B, C_in, Hf, patch, Wf, patch)
    patches = patches.transpose(0, 2, 4, 1, 3, 5).reshape(M, K).astype(compute_dtype)

    # PyTorch Conv2d weight (F,Cin,p,p) -> (K,F); nn.Linear (E,F): y = x@W.T+b.
    wc = jnp.pad(conv_w.reshape(feature_dim, K).T.astype(compute_dtype),
                 ((0, 0), (0, F_pad - feature_dim)))
    bc = jnp.pad(conv_b.astype(jnp.float32),
                 (0, F_pad - feature_dim)).reshape(1, F_pad)
    wp = jnp.pad(proj_w.T.astype(compute_dtype),
                 ((0, F_pad - feature_dim), (0, E_pad - embed_dim)))
    bp = jnp.pad(proj_b.astype(jnp.float32),
                 (0, E_pad - embed_dim)).reshape(1, E_pad)

    out = pl.pallas_call(
        hybrid_embed_kernel,
        out_shape=jax.ShapeDtypeStruct((M, E_pad), out_dtype),
        grid_spec=pltpu.PrefetchScalarGridSpec(
            num_scalar_prefetch=0,
            grid=(grid_m,),
            in_specs=[
                # Streamed, row-tiled patches (K unpadded = full last dim).
                pl.BlockSpec((TILE_M, K), lambda i: (i, 0),
                             pipeline_mode=pl.Buffered(n_in_buf)),
                # Grid-invariant operands: single-buffered to save VMEM.
                pl.BlockSpec((K, F_pad), lambda i: (0, 0),
                             pipeline_mode=pl.Buffered(1)),
                pl.BlockSpec((1, F_pad), lambda i: (0, 0),
                             pipeline_mode=pl.Buffered(1)),
                pl.BlockSpec((F_pad, E_pad), lambda i: (0, 0),
                             pipeline_mode=pl.Buffered(1)),
                pl.BlockSpec((1, E_pad), lambda i: (0, 0),
                             pipeline_mode=pl.Buffered(1)),
            ],
            out_specs=pl.BlockSpec((TILE_M, E_pad), lambda i: (i, 0)),
        ),
        compiler_params=pltpu.CompilerParams(
            # TODO(synk): on v7x (2 TensorCores) switch to pltpu.CORE_PARALLEL
            # on the row axis (with >=2 row tiles) to shard across cores.
            dimension_semantics=("parallel",),
            vmem_limit_bytes=int(budget),
        ),
    )(patches, wc, bc, wp, bp)

    return out[:, :embed_dim].reshape(B, N, embed_dim)


def hybrid_embed_ref(x, conv_w, conv_b, proj_w, proj_b, *, patch=4):
    """Pure-JAX reference matching the PyTorch semantics (f32)."""
    B, C_in, H, W = x.shape
    Hf, Wf = H // patch, W // patch
    feature_dim = conv_w.shape[0]
    patches = x.reshape(B, C_in, Hf, patch, Wf, patch)
    patches = patches.transpose(0, 2, 4, 1, 3, 5).reshape(B, Hf * Wf, -1)
    feat = jnp.maximum(
        patches @ conv_w.reshape(feature_dim, -1).T + conv_b, 0.0)  # (B, N, Cf)
    return feat @ proj_w.T + proj_b                                  # (B, N, E)


if __name__ == "__main__":
    B, C_in, H, W = 2, 4, 16, 16
    patch = 4
    feature_dim = 32      # backbone output channels
    embed_dim = 48        # HybridEmbed embed_dim

    key = jax.random.PRNGKey(0)
    kx, kcw, kcb, kpw, kpb = jax.random.split(key, 5)
    x = jax.random.normal(kx, (B, C_in, H, W), dtype=jnp.float32)
    conv_w = 0.05 * jax.random.normal(kcw, (feature_dim, C_in, patch, patch), jnp.float32)
    conv_b = 0.01 * jax.random.normal(kcb, (feature_dim,), jnp.float32)
    proj_w = 0.05 * jax.random.normal(kpw, (embed_dim, feature_dim), jnp.float32)
    proj_b = 0.01 * jax.random.normal(kpb, (embed_dim,), jnp.float32)

    N = (H // patch) * (W // patch)
    ref = hybrid_embed_ref(x, conv_w, conv_b, proj_w, proj_b, patch=patch)

    # f32 compute path: tight match to the PyTorch semantics.
    out_f32 = jax.block_until_ready(
        hybrid_embed_forward(x, conv_w, conv_b, proj_w, proj_b, patch=patch,
                             compute_dtype=jnp.float32))
    assert out_f32.shape == (B, N, embed_dim), out_f32.shape
    assert jnp.allclose(out_f32, ref, atol=1e-4, rtol=1e-4), "f32 mismatch vs reference"

    # bf16 operand path (MXU-friendly, f32 accumulation): looser tolerance.
    out_bf16 = jax.block_until_ready(
        hybrid_embed_forward(x, conv_w, conv_b, proj_w, proj_b, patch=patch,
                             compute_dtype=jnp.bfloat16))
    assert out_bf16.shape == (B, N, embed_dim), out_bf16.shape
    assert jnp.allclose(out_bf16, ref, atol=3e-2, rtol=3e-2), "bf16 mismatch vs reference"

    print("KERNEL_OK")
</pallas_src>

<mosaic_0001>
module attributes {stable_mosaic.version = 11 : i64} {
  func.func @hybrid_embed_kernel(%arg0: i32, %arg1: memref<32x64xf32, #tpu.memory_space<vmem>>, %arg2: memref<64x128xf32, #tpu.memory_space<vmem>>, %arg3: memref<1x128xf32, #tpu.memory_space<vmem>>, %arg4: memref<128x128xf32, #tpu.memory_space<vmem>>, %arg5: memref<1x128xf32, #tpu.memory_space<vmem>>, %arg6: memref<32x128xf32, #tpu.memory_space<vmem>>) attributes {dimension_semantics = [#tpu.dimension_semantics<parallel>], iteration_bounds = array<i64: 1>, scalar_prefetch = 0 : i64, scratch_operands = 0 : i64, tpu.core_type = #tpu.core_type<tc>, window_params = [{pipeline_mode = #tpu.pipeline_mode<double_buffered>, transform_indices = @transform_0, window_bounds = array<i64: 32, 64>}, {pipeline_mode = #tpu.pipeline_mode<synchronous>, transform_indices = @transform_1, window_bounds = array<i64: 64, 128>}, {pipeline_mode = #tpu.pipeline_mode<synchronous>, transform_indices = @transform_2, window_bounds = array<i64: 1, 128>}, {pipeline_mode = #tpu.pipeline_mode<synchronous>, transform_indices = @transform_3, window_bounds = array<i64: 128, 128>}, {pipeline_mode = #tpu.pipeline_mode<synchronous>, transform_indices = @transform_4, window_bounds = array<i64: 1, 128>}, {transform_indices = @transform_5, window_bounds = array<i64: 32, 128>}]} {
    %c0 = arith.constant 0 : index
    %c0_0 = arith.constant 0 : index
    %0 = vector.load %arg1[%c0, %c0_0] : memref<32x64xf32, #tpu.memory_space<vmem>>, vector<32x64xf32>
    %c0_1 = arith.constant 0 : index
    %c0_2 = arith.constant 0 : index
    %1 = vector.load %arg2[%c0_1, %c0_2] : memref<64x128xf32, #tpu.memory_space<vmem>>, vector<64x128xf32>
    %cst = arith.constant dense<0.000000e+00> : vector<32x128xf32>
    %2 = tpu.matmul %0, %1, %cst {dimension_numbers = #tpu.dot_dimension_numbers<[1], [0], [0], [1], [0, 0, 1, 1], [], []>} : vector<32x64xf32>, vector<64x128xf32>, vector<32x128xf32> -> vector<32x128xf32>
    %c0_3 = arith.constant 0 : index
    %c0_4 = arith.constant 0 : index
    %3 = vector.load %arg3[%c0_3, %c0_4] : memref<1x128xf32, #tpu.memory_space<vmem>>, vector<1x128xf32>
    %4 = vector.broadcast %3 : vector<1x128xf32> to vector<32x128xf32>
    %5 = arith.addf %2, %4 : vector<32x128xf32>
    %cst_5 = arith.constant 0.000000e+00 : f32
    %6 = vector.broadcast %cst_5 : f32 to vector<32x128xf32>
    %7 = arith.maximumf %5, %6 : vector<32x128xf32>
    %c0_6 = arith.constant 0 : index
    %c0_7 = arith.constant 0 : index
    %8 = vector.load %arg4[%c0_6, %c0_7] : memref<128x128xf32, #tpu.memory_space<vmem>>, vector<128x128xf32>
    %cst_8 = arith.constant dense<0.000000e+00> : vector<32x128xf32>
    %9 = tpu.matmul %7, %8, %cst_8 {dimension_numbers = #tpu.dot_dimension_numbers<[1], [0], [0], [1], [0, 0, 1, 1], [], []>} : vector<32x128xf32>, vector<128x128xf32>, vector<32x128xf32> -> vector<32x128xf32>
    %c0_9 = arith.constant 0 : index
    %c0_10 = arith.constant 0 : index
    %10 = vector.load %arg5[%c0_9, %c0_10] : memref<1x128xf32, #tpu.memory_space<vmem>>, vector<1x128xf32>
    %11 = vector.broadcast %10 : vector<1x128xf32> to vector<32x128xf32>
    %12 = arith.addf %9, %11 : vector<32x128xf32>
    %c0_11 = arith.constant 0 : index
    %c0_12 = arith.constant 0 : index
    %13 = vector.load %arg6[%c0_11, %c0_12] : memref<32x128xf32, #tpu.memory_space<vmem>>, vector<32x128xf32>
    tpu.vector_store %arg6[%c0_11, %c0_12], %12 {strides = array<i32>} : memref<32x128xf32, #tpu.memory_space<vmem>>, vector<32x128xf32>,
    return
  }
  func.func @transform_0(%arg0: i32) -> (i32, i32) {
    %c0_i32 = arith.constant 0 : i32
    %c0_i32_0 = arith.constant 0 : i32
    return %arg0, %c0_i32 : i32, i32
  }
  func.func @transform_1(%arg0: i32) -> (i32, i32) {
    %c0_i32 = arith.constant 0 : i32
    %c0_i32_0 = arith.constant 0 : i32
    %c0_i32_1 = arith.constant 0 : i32
    return %c0_i32, %c0_i32_0 : i32, i32
  }
  func.func @transform_2(%arg0: i32) -> (i32, i32) {
    %c0_i32 = arith.constant 0 : i32
    %c0_i32_0 = arith.constant 0 : i32
    %c0_i32_1 = arith.constant 0 : i32
    return %c0_i32, %c0_i32_0 : i32, i32
  }
  func.func @transform_3(%arg0: i32) -> (i32, i32) {
    %c0_i32 = arith.constant 0 : i32
    %c0_i32_0 = arith.constant 0 : i32
    %c0_i32_1 = arith.constant 0 : i32
    return %c0_i32, %c0_i32_0 : i32, i32
  }
  func.func @transform_4(%arg0: i32) -> (i32, i32) {
    %c0_i32 = arith.constant 0 : i32
    %c0_i32_0 = arith.constant 0 : i32
    %c0_i32_1 = arith.constant 0 : i32
    return %c0_i32, %c0_i32_0 : i32, i32
  }
  func.func @transform_5(%arg0: i32) -> (i32, i32) {
    %c0_i32 = arith.constant 0 : i32
    %c0_i32_0 = arith.constant 0 : i32
    return %arg0, %c0_i32 : i32, i32
  }
}

</mosaic_0001>

<bundles_post_ra>
// kernel: tpu_custom_call.1
= control target key start
LH: loop header
LB: loop body
LE: loop exit
PB: predicated region body
PF: predicated region fallthrough
CT: control target
= control target key end

     0   :  { %10 = vsyncpa [#allocation3], 0  ;;  %s573_s0 = inlined_call_operand.hbm [shape: f32[32,64], index: 0, kind: input, shape index: {}]   ;;  %s574_s1 = inlined_call_operand.hbm [shape: f32[64,128], index: 1, kind: input, shape index: {}]   ;;  %s575_s2 = inlined_call_operand.vmem [shape: f32[1,128], index: 2, kind: input, shape index: {}]   ;;  %s576_s3 = inlined_call_operand.hbm [shape: f32[128,128], index: 3, kind: input, shape index: {}]   ;;  %s577_s4 = inlined_call_operand.vmem [shape: f32[1,128], index: 4, kind: input, shape index: {}]   ;;  %s578_s5 = inlined_call_operand.hbm [shape: f32[32,128], index: 5, kind: output, shape index: {}]  }
   0x1   :  { %11 = vsyncpa [#allocation6], 0 }
   0x2   :  { %12 = vsyncpa [#allocation4], 0  ;;  %s503_s18 = smov [#allocation5]   ;;  %s504_s20 = smov [#allocation2]  }
   0x3   :  { %s30_s19 = sshll.u32 %s503_s18, 4  ;;  %s18_s21 = sshll.u32 %s504_s20, 4  ;;  %s31_s19 = int_to_ptr.vmem [resolvable:$true] %s30_s19  ;;  %s19_s21 = int_to_ptr.vmem [resolvable:$true] %s18_s21 }
   0x4   :  { %s425_s22 = scalar_lea.vmem %s31_s19, 1024  ;;  %p430_p1 = scmp.lt.s32.totalorder %s31_s19, %s31_s19 }
   0x5   :  { %p426_p0 = scmp.ne.s32.totalorder %s31_s19, %s425_s22  ;;  %p431_p2 = scmp.lt.s32.totalorder %s425_s22, %s425_s22 }
   0x7   :  { %p432_p3 = por %p431_p2, %p430_p1 }
   0x9   :  { %p433_p4 = pnand %p432_p3, %p426_p0 }
   0xb   :  { %436 = shalt.err (!%p433_p4)
}
   0xc   :  { %s505_s23 = smov 128   ;;  %s506_s24 = smov 8  }
   0xd   :  { %36 = dma.hbm_to_vmem [thread:$0]  %s574_s1, 1024, %s31_s19, [#allocation6], %s505_s23, %s505_s23, %s506_s24  }
   0xe   :  { %s445_s27 = scalar_lea.vmem %s19_s21, 512  ;;  %p450_p6 = scmp.lt.s32.totalorder %s19_s21, %s19_s21 }
   0xf   :  { %p446_p5 = scmp.ne.s32.totalorder %s19_s21, %s445_s27  ;;  %p451_p7 = scmp.lt.s32.totalorder %s445_s27, %s445_s27 }
  0x11   :  { %p452_p8 = por %p451_p7, %p450_p6 }
  0x13   :  { %p453_p9 = pnand %p452_p8, %p446_p5 }
  0x15   :  { %456 = shalt.err (!%p453_p9)
}
  0x16   :  { %24 = dma.hbm_to_vmem [thread:$0]  %s573_s0, 512, %s19_s21, [#allocation3], %s505_s23, %s505_s23, %s506_s24  }
  0x17   :  { %s507_s30 = smov [#allocation7]  }
  0x18   :  { %s44_s6 = sshll.u32 %s507_s30, 4  ;;  %s45_s6 = int_to_ptr.vmem [resolvable:$true] %s44_s6 }
  0x19   :  { %s465_s7 = scalar_lea.vmem %s45_s6, 2048  ;;  %p470_p11 = scmp.lt.s32.totalorder %s45_s6, %s45_s6 }
  0x1a   :  { %p466_p10 = scmp.ne.s32.totalorder %s45_s6, %s465_s7  ;;  %p471_p12 = scmp.lt.s32.totalorder %s465_s7, %s465_s7 }
  0x1c   :  { %p472_p13 = por %p471_p12, %p470_p11 }
  0x1e   :  { %p473_p0 = pnand %p472_p13, %p466_p10 }
  0x20   :  { %476 = shalt.err (!%p473_p0)
}
  0x21   :  { %50 = dma.hbm_to_vmem [thread:$0]  %s576_s3, 2048, %s45_s6, [#allocation6], %s505_s23, %s505_s23, %s506_s24  }
  0x22   :  { %497 = dma.done.wait [#allocation3], 512  }
  0x23   :  { %498 = vsyncadd [#allocation3], 4294966784 }
  0x24   :  { %499 = dma.done.wait [#allocation6], 3072  }
  0x25   :  { %500 = vsyncadd [#allocation6], 4294964224  ;;  %v73_v0 = vld [vmem:[#allocation5 + $0x38] sm:$0xff]  ;;  %v72_v1 = vld [vmem:[#allocation5 + $0x30] sm:$0xff]  ;;  %vm81_vm0 = vcmask 523264  }
  0x26   :  { %351 = vmatprep.subr.mxu0 %v73_v0  ;;  %v71_v2 = vld [vmem:[#allocation5 + $0x28] sm:$0xff]  ;;  %v62_v3 = vld [vmem:[#allocation2] sm:$0xff]  ;;  %v198_v5 = vld [vmem:[#allocation7 + $0x78] sm:$0xff] }
  0x27   :  { %352 = vmatpush3.msra.mxu0 %v73_v0  ;;  %367 = vmatprep.mubr.msk.f32.mxu0 %vm81_vm0, %v62_v3  ;;  %v70_v4 = vld [vmem:[#allocation5 + $0x20] sm:$0xff]  ;;  %v197_v6 = vld [vmem:[#allocation7 + $0x70] sm:$0xff]  ;;  %v69_v7 = vld [vmem:[#allocation5 + $0x18] sm:$0xff] }
  0x28   :  { %353 = vmatprep.subr.mxu0 %v72_v1  ;;  %373 = vmatprep.subr.mxu1 %v198_v5  ;;  %v196_v8 = vld [vmem:[#allocation7 + $0x68] sm:$0xff]  ;;  %v68_v9 = vld [vmem:[#allocation5 + $0x10] sm:$0xff]  ;;  %v195_v10 = vld [vmem:[#allocation7 + $0x60] sm:$0xff] }
  0x29   :  { %354 = vmatpush3.msra.mxu0 %v72_v1  ;;  %374 = vmatpush3.msra.mxu1 %v198_v5  ;;  %v67_v11 = vld [vmem:[#allocation5 + $0x8] sm:$0xff]  ;;  %v194_v12 = vld [vmem:[#allocation7 + $0x58] sm:$0xff]  ;;  %v66_v13 = vld [vmem:[#allocation5] sm:$0xff] }
  0x2a   :  { %355 = vmatprep.subr.mxu0 %v71_v2  ;;  %375 = vmatprep.subr.mxu1 %v197_v6  ;;  %v193_v14 = vld [vmem:[#allocation7 + $0x50] sm:$0xff]  ;;  %v63_v15 = vld [vmem:[#allocation2 + $0x8] sm:$0xff]  ;;  %v191_v18 = vld [vmem:[#allocation7 + $0x40] sm:$0xff] }
  0x2b   :  { %356 = vmatpush3.msra.mxu0 %v71_v2  ;;  %376 = vmatpush3.msra.mxu1 %v197_v6  ;;  %v192_v16 = vld [vmem:[#allocation7 + $0x48] sm:$0xff]  ;;  %v64_v17 = vld [vmem:[#allocation2 + $0x10] sm:$0xff]  ;;  %v65_v19 = vld [vmem:[#allocation2 + $0x18] sm:$0xff] }
  0x2c   :  { %357 = vmatprep.subr.mxu0 %v70_v4  ;;  %377 = vmatprep.subr.mxu1 %v196_v8  ;;  %v190_v20 = vld [vmem:[#allocation7 + $0x38] sm:$0xff]  ;;  %v189_v21 = vld [vmem:[#allocation7 + $0x30] sm:$0xff]  ;;  %v188_v22 = vld [vmem:[#allocation7 + $0x28] sm:$0xff] }
  0x2d   :  { %358 = vmatpush3.msra.mxu0 %v70_v4  ;;  %378 = vmatpush3.msra.mxu1 %v196_v8  ;;  %v187_v23 = vld [vmem:[#allocation7 + $0x20] sm:$0xff]  ;;  %v186_v24 = vld [vmem:[#allocation7 + $0x18] sm:$0xff]  ;;  %v185_v25 = vld [vmem:[#allocation7 + $0x10] sm:$0xff] }
  0x2e   :  { %359 = vmatprep.subr.mxu0 %v69_v7  ;;  %379 = vmatprep.subr.mxu1 %v195_v10  ;;  %v184_v26 = vld [vmem:[#allocation7 + $0x8] sm:$0xff]  ;;  %v183_v27 = vld [vmem:[#allocation7] sm:$0xff] }
  0x2f   :  { %360 = vmatpush3.msra.mxu0 %v69_v7  ;;  %380 = vmatpush3.msra.mxu1 %v195_v10  ;;  %v313_v28 = vld [vmem:[%s575_s2] ss:$0 sm:$0xff]  ;;  %s508_s2 = smov [#allocation8]  }
  0x30   :  { %361 = vmatprep.subr.mxu0 %v68_v9  ;;  %381 = vmatprep.subr.mxu1 %v194_v12  ;;  %v318_v41 = vld [vmem:[%s577_s4] ss:$0 sm:$0xff]  ;;  %s300_s11 = sshll.u32 %s508_s2, 4  ;;  %s301_s11 = int_to_ptr.vmem [resolvable:$true] %s300_s11 }
  0x31   :  { %362 = vmatpush3.msra.mxu0 %v68_v9  ;;  %382 = vmatpush3.msra.mxu1 %v194_v12  ;;  %s477_s12 = scalar_lea.vmem %s301_s11, 512  ;;  %p482_p2 = scmp.lt.s32.totalorder %s301_s11, %s301_s11 }
  0x32   :  { %363 = vmatprep.subr.mxu0 %v67_v11  ;;  %383 = vmatprep.subr.mxu1 %v193_v14  ;;  %p478_p1 = scmp.ne.s32.totalorder %s301_s11, %s477_s12  ;;  %p483_p3 = scmp.lt.s32.totalorder %s477_s12, %s477_s12 }
  0x33   :  { %364 = vmatpush3.msra.mxu0 %v67_v11  ;;  %384 = vmatpush3.msra.mxu1 %v193_v14 }
  0x34   :  { %365 = vmatprep.subr.mxu0 %v66_v13  ;;  %385 = vmatprep.subr.mxu1 %v192_v16  ;;  %p484_p4 = por %p483_p3, %p482_p2 }
  0x35   :  { %366 = vmatpush3.msra.mxu0 %v66_v13  ;;  %386 = vmatpush3.msra.mxu1 %v192_v16 }
  0x36   :  { %368 = vmatmul.mubr.msk.f32.vlgmr.msra.gmra.mxu0 %vm81_vm0, %v63_v15  ;;  %387 = vmatprep.subr.mxu1 %v191_v18  ;;  %p485_p5 = pnand %p484_p4, %p478_p1 }
  0x37   :  { %370 = vmatprep.mubr.msk.f32.mxu0 %vm81_vm0, %v64_v17  ;;  %388 = vmatpush3.msra.mxu1 %v191_v18 }
  0x38   :  { %389 = vmatprep.subr.mxu1 %v190_v20 }
  0x39   :  { %390 = vmatpush3.msra.mxu1 %v190_v20 }
  0x3a   :  { %371 = vmatmul.mubr.msk.f32.gmra.mxu0 %vm81_vm0, %v65_v19  ;;  %391 = vmatprep.subr.mxu1 %v189_v21 }
  0x3b   :  { %392 = vmatpush3.msra.mxu1 %v189_v21 }
  0x3c   :  { %393 = vmatprep.subr.mxu1 %v188_v22 }
  0x3d   :  { %394 = vmatpush3.msra.mxu1 %v188_v22 }
  0x3e   :  { %395 = vmatprep.subr.mxu1 %v187_v23 }
  0x3f   :  { %396 = vmatpush3.msra.mxu1 %v187_v23 }
  0x40   :  { %397 = vmatprep.subr.mxu1 %v186_v24 }
  0x41   :  { %398 = vmatpush3.msra.mxu1 %v186_v24 }
  0x42   :  { %399 = vmatprep.subr.mxu1 %v185_v25 }
  0x43   :  { %400 = vmatpush3.msra.mxu1 %v185_v25 }
  0x44   :  { %401 = vmatprep.subr.mxu1 %v184_v26 }
  0x45   :  { %402 = vmatpush3.msra.mxu1 %v184_v26 }
  0x46   :  { %403 = vmatprep.subr.mxu1 %v183_v27 }
  0x47   :  { %404 = vmatpush3.msra.mxu1 %v183_v27 }
  0xf6   :  { %v369_v29 = vpop.f32.mrf.mxu0 }
  0xf7   :  { %v166_v30 = vadd.f32 %v369_v29, %v313_v28 }
  0xf8   :  { %v160_v31 = vpop.f32.mrf.mxu0 }
  0xf9   :  { %v161_v32 = vadd.f32 %v313_v28, %v160_v31  ;;  %v180_v35 = vmax.f32 %v166_v30, 0.0 }
  0xfa   :  { %v372_v33 = vpop.f32.mrf.mxu0 }
  0xfb   :  { %v179_v34 = vmax.f32 %v161_v32, 0.0  ;;  %v176_v36 = vadd.f32 %v372_v33, %v313_v28 }
  0xfc   :  { %v170_v37 = vpop.f32.mrf.mxu0 }
  0xfd   :  { %v171_v38 = vadd.f32 %v313_v28, %v170_v37  ;;  %405 = vmatprep.mubr.f32.mxu1 %v179_v34  ;;  %v182_v40 = vmax.f32 %v176_v36, 0.0 }
  0xfe   :  { %406 = vmatmul.mubr.f32.vlgmr.msra.gmra.mxu1 %v180_v35 }
  0xff   :  { %v181_v39 = vmax.f32 %v171_v38, 0.0 }
 0x101   :  { %408 = vmatprep.mubr.f32.mxu1 %v181_v39 }
 0x102   :  { %409 = vmatmul.mubr.f32.gmra.mxu1 %v182_v40 }
 0x1be   :  { %v407_v42 = vpop.f32.mrf.mxu1 }
 0x1bf   :  { %v278_v43 = vadd.f32 %v407_v42, %v318_v41 }
 0x1c0   :  { %v272_v44 = vpop.f32.mrf.mxu1 }
 0x1c1   :  { %292 = vst [vmem:[#allocation8 + $0x8] sm:$0xff] %v278_v43  ;;  %v273_v45 = vadd.f32 %v318_v41, %v272_v44 }
 0x1c2   :  { %v410_v46 = vpop.f32.mrf.mxu1 }
 0x1c3   :  { %291 = vst [vmem:[#allocation8] sm:$0xff] %v273_v45  ;;  %v288_v47 = vadd.f32 %v410_v46, %v318_v41 }
 0x1c4   :  { %v282_v48 = vpop.f32.mrf.mxu1 }
 0x1c5   :  { %294 = vst [vmem:[#allocation8 + $0x18] sm:$0xff] %v288_v47  ;;  %v283_v49 = vadd.f32 %v318_v41, %v282_v48 }
 0x1c7   :  { %293 = vst [vmem:[#allocation8 + $0x10] sm:$0xff] %v283_v49 }
 0x1c8   :  { %488 = shalt.err (!%p485_p5)
}
 0x1c9   :  { %306 = dma.vmem_to_hbm [thread:$0]  %s301_s11, 512, %s578_s5, [#allocation4], %s505_s23, %s505_s23, %s506_s24  }
 0x1ca   :  { %501 = dma.done.wait [#allocation4], 512  }
 0x1cb   :  { %502 = vsyncadd [#allocation4], 4294966784 }
 0x1cc   :  { %310 = vsyncpa [#allocation3], 1 }
 0x1cd   :  { %311 = vsyncpa [#allocation6], 1 }
 0x1ce   :  { %312 = vsyncpa [#allocation4], 1 }

</bundles_post_ra>
